<compile_context>
chip_gen: v5e
topology: v5e:2x2
jax: 0.10.0
libtpu: 0.0.40
codegen_flags: <defaults>
</compile_context>

<pallas_src>
import jax
import jax.numpy as jnp
from jax.experimental import pallas as pl
from jax.experimental.pallas import tpu as pltpu


# ----------------------------------------------------------------------------
# Generation-aware knobs
# ----------------------------------------------------------------------------
def _vmem_capacity_bytes():
    try:
        return int(pltpu.get_tpu_info().vmem_capacity_bytes)
    except Exception:
        return 128 << 20  # v5e / v6e default


def _gen_params():
    cap = _vmem_capacity_bytes()
    # v7x (64 MiB VMEM, 3.2 TB/s HBM): per-step overhead is relatively expensive
    # -> ~4 MiB blocks.  v5e/v6e (128 MiB VMEM): ~8 MiB blocks.
    target_bytes = (4 << 20) if cap <= (64 << 20) else (8 << 20)
    # Never request the full physical VMEM; leave room for compiler scratch.
    vmem_clamp = min(3 * cap // 4, 64 << 20)
    return target_bytes, vmem_clamp


def _sublane_multiple(dtype):
    # Native sublane packing: f32 -> 8, bf16 -> 16, int8/fp8 -> 32.
    return 8 * max(1, 4 // jnp.dtype(dtype).itemsize)


def _choose_tiles(B, S, H, dtype, target_bytes):
    """Pick (batch_tile, seq_tile) so one x-block is ~target_bytes."""
    itemsize = jnp.dtype(dtype).itemsize
    sub = _sublane_multiple(dtype)
    row_bytes = H * itemsize
    slab = S * row_bytes  # one batch's activation slab

    if slab <= target_bytes:
        ts = S  # full seq per step (legal: equals the full dim)
        max_bt = int(min(B, max(1, target_bytes // max(slab, 1))))
        divisors = [d for d in range(1, B + 1) if B % d == 0 and d <= max_bt]
        # Prefer an even number of batch grid steps so v7x's two TensorCores
        # split the "parallel" batch axis evenly (costs nothing on v5e/v6e).
        even = [d for d in divisors if (B // d) % 2 == 0]
        bt = max(even) if even else max(divisors)
    else:
        bt = 1
        ts = max(sub, (target_bytes // row_bytes) // sub * sub)
        ts = min(ts, S)

    # Avoid a (1, 1) grid (would leave one v7x TensorCore idle): split seq.
    if bt == B and ts == S:
        half = (S // 2) // sub * sub
        if half >= sub:
            ts = half
    return bt, ts


# ----------------------------------------------------------------------------
# Mask construction (wrapper side)
# ----------------------------------------------------------------------------
def make_shared_dropout_mask(key, B, H, p):
    """(B, 1, H) float32 mask: bernoulli(1-p) / (1-p), shared across the seq axis."""
    keep = jax.random.bernoulli(key, 1.0 - p, (B, 1, H))
    return keep.astype(jnp.float32) * jnp.float32(1.0 / (1.0 - p))


# ----------------------------------------------------------------------------
# Path 1: standalone shared-dropout multiply (HBM-bandwidth bound)
# ----------------------------------------------------------------------------
def shared_dropout_kernel(x_ref, m_ref, o_ref):
    # x_ref: (bt, ts, H) activations; m_ref: (bt, 1, H) f32 mask pre-scaled by
    # 1/(1-p).  Broadcast multiply over the seq axis, cast at the store.
    o_ref[...] = (x_ref[...] * m_ref[...]).astype(o_ref.dtype)


def apply_shared_dropout_mask(x, mask, *, donate_x=False):
    """x: (B, S, H); mask: (B, 1, H) float32 pre-scaled by 1/(1-p)."""
    B, S, H = x.shape
    target_bytes, vmem_clamp = _gen_params()

    # Keep the output store lane-dense: pad H to a multiple of 128, slice after.
    Hp = ((H + 127) // 128) * 128
    if Hp != H:
        x = jnp.pad(x, ((0, 0), (0, 0), (0, Hp - H)))
        mask = jnp.pad(mask, ((0, 0), (0, 0), (0, Hp - H)))

    bt, ts = _choose_tiles(B, S, Hp, x.dtype, target_bytes)
    grid = (pl.cdiv(B, bt), pl.cdiv(S, ts))

    blk_bytes = bt * ts * Hp * x.dtype.itemsize
    mask_blk_bytes = bt * Hp * 4
    # double-buffered in/out/mask blocks + headroom, derived from the actual
    # chosen block size, clamped generation-aware (never full physical VMEM).
    vmem_limit = int(min(max(3 * (2 * blk_bytes + mask_blk_bytes), 32 << 20),
                         vmem_clamp))
    cost = pl.CostEstimate(
        flops=B * S * Hp,
        transcendentals=0,
        bytes_accessed=2 * B * S * Hp * x.dtype.itemsize + B * Hp * 4,
    )

    out = pl.pallas_call(
        shared_dropout_kernel,
        out_shape=jax.ShapeDtypeStruct((B, S, Hp), x.dtype),
        grid=grid,
        in_specs=[
            pl.BlockSpec((bt, ts, Hp), lambda b, s: (b, s, 0)),
            # Seq-invariant block index: the tiny mask is not re-DMA'd per seq step.
            pl.BlockSpec((bt, 1, Hp), lambda b, s: (b, 0, 0)),
        ],
        out_specs=pl.BlockSpec((bt, ts, Hp), lambda b, s: (b, s, 0)),
        compiler_params=pltpu.CompilerParams(
            dimension_semantics=("parallel", "parallel"),  # no cross-step state
            vmem_limit_bytes=vmem_limit,
        ),
        cost_estimate=cost,
        input_output_aliases=({0: 0} if donate_x else {}),
    )(x, mask)

    return out[..., :H] if Hp != H else out


def shared_dropout(x, key, p=0.33, *, donate_x=False):
    """Training-mode shared dropout forward. x: (B, S, H)."""
    if not 0.0 <= p < 1.0:
        raise ValueError(f"dropout p must be in [0, 1), got {p}")
    if p == 0.0:
        return x
    B, _, H = x.shape
    mask = make_shared_dropout_mask(key, B, H, p)
    return apply_shared_dropout_mask(x, mask, donate_x=donate_x)


# ----------------------------------------------------------------------------
# Path 2: dropout fused into the edge-scoring MLP (MXU-bound)
#   out = relu((x * mask_in) @ W + b) * mask_out
# ----------------------------------------------------------------------------
def fused_dropout_mlp_kernel(x_ref, w_ref, b_ref, min_ref, mout_ref, o_ref, acc_ref):
    k = pl.program_id(3)

    @pl.when(k == 0)
    def _():
        acc_ref[...] = jnp.zeros_like(acc_ref)

    # Dropout prologue: 1 VALU op/elem, hides under the MXU matmul.
    xb = x_ref[...] * min_ref[...]                      # (ts, tk) * (1, tk)
    acc_ref[...] += jnp.dot(xb, w_ref[...], preferred_element_type=jnp.float32)

    @pl.when(k == pl.num_programs(3) - 1)
    def _():
        h = jnp.maximum(acc_ref[...] + b_ref[...], 0.0)     # bias + ReLU epilogue
        o_ref[...] = (h * mout_ref[...]).astype(o_ref.dtype)  # dropout epilogue


def fused_dropout_mlp(x, w, b, mask_in, mask_out, *, ts=None, tn=128, tk=128):
    """Encoder-output dropout fused into DeepBiaffineScorer's head/dep MLP.

    x: (B, S, Din), w: (Din, Dmlp), b: (Dmlp,),
    mask_in: (B, 1, Din) f32, mask_out: (B, 1, Dmlp) f32, both pre-scaled by 1/(1-p).
    """
    B, S, Din = x.shape
    Dmlp = w.shape[1]
    if ts is None:
        ts = S if S <= 256 else 256
    tn = min(tn, Dmlp)
    tk = min(tk, Din)
    # TODO(synk): pad S / Din / Dmlp wrapper-side for non-divisible shapes; the
    # demo shapes (and BERT-ish sizes) divide evenly.
    assert w.shape[0] == Din and S % ts == 0 and Din % tk == 0 and Dmlp % tn == 0

    b2 = b.reshape(1, Dmlp)
    grid = (B, S // ts, Dmlp // tn, Din // tk)  # reduction axis last

    cost = pl.CostEstimate(
        flops=2 * B * S * Din * Dmlp + 3 * B * S * Dmlp,
        transcendentals=0,
        bytes_accessed=(x.size * x.dtype.itemsize + w.size * w.dtype.itemsize
                        + B * S * Dmlp * x.dtype.itemsize
                        + (mask_in.size + mask_out.size + b2.size) * 4),
    )

    return pl.pallas_call(
        fused_dropout_mlp_kernel,
        out_shape=jax.ShapeDtypeStruct((B, S, Dmlp), x.dtype),
        grid=grid,
        in_specs=[
            pl.BlockSpec((pl.Squeezed(), ts, tk), lambda bi, si, ni, ki: (bi, si, ki)),  # x
            pl.BlockSpec((tk, tn), lambda bi, si, ni, ki: (ki, ni)),                     # W
            pl.BlockSpec((1, tn), lambda bi, si, ni, ki: (0, ni)),                       # bias
            pl.BlockSpec((pl.Squeezed(), 1, tk), lambda bi, si, ni, ki: (bi, 0, ki)),    # mask_in
            pl.BlockSpec((pl.Squeezed(), 1, tn), lambda bi, si, ni, ki: (bi, 0, ni)),    # mask_out
        ],
        out_specs=pl.BlockSpec((pl.Squeezed(), ts, tn),
                               lambda bi, si, ni, ki: (bi, si, ni)),
        scratch_shapes=[pltpu.VMEM((ts, tn), jnp.float32)],
        compiler_params=pltpu.CompilerParams(
            dimension_semantics=("parallel", "parallel", "parallel", "arbitrary"),
        ),
        cost_estimate=cost,
    )(x, w, b2, mask_in, mask_out)
    # TODO(synk): the biaffine einsum 'bxi,oij,byj->boxy' of DeepBiaffineScorer is
    # left to XLA (a further fusion candidate, not implemented here).


if __name__ == "__main__":
    key = jax.random.PRNGKey(0)
    kx, kmask_enc, kx2, kw, kb, kmask_in, kmask_out = jax.random.split(key, 7)

    p = 0.33  # torch.nn.Dropout(0.33) == dropout_ind in EdgeFactoredParser

    # --- Part 1: standalone dropout on the (B, S, H) encoder activations -------
    B, S, H = 2, 8, 128
    x = jax.random.normal(kx, (B, S, H), dtype=jnp.float32)
    out = shared_dropout(x, kmask_enc, p=p)
    out = jax.block_until_ready(out)

    mask = make_shared_dropout_mask(kmask_enc, B, H, p)
    ref = x * mask  # exact f32 reference (same mask regenerated from same key)
    assert out.shape == x.shape
    assert bool(jnp.allclose(out, ref, atol=1e-6)), "standalone dropout mismatch"
    # Dropout semantics, checked on the mask itself (no out/x division -> no NaNs):
    scale = 1.0 / (1.0 - p)
    assert bool(jnp.all(jnp.logical_or(mask == 0.0, jnp.abs(mask - scale) < 1e-6))), \
        "mask values are not {0, 1/(1-p)}"

    # --- Part 2: dropout fused into the edge-scoring MLP -----------------------
    Din, Dmlp = 256, 256  # encoder repr size -> edge_mlp_size (small demo shapes)
    x2 = jax.random.normal(kx2, (B, S, Din), dtype=jnp.float32)
    w = jax.random.normal(kw, (Din, Dmlp), dtype=jnp.float32) / jnp.sqrt(float(Din))
    bias = jax.random.normal(kb, (Dmlp,), dtype=jnp.float32) * 0.1
    m_in = make_shared_dropout_mask(kmask_in, B, Din, p)
    m_out = make_shared_dropout_mask(kmask_out, B, Dmlp, p)

    fused = fused_dropout_mlp(x2, w, bias, m_in, m_out)
    fused = jax.block_until_ready(fused)

    ref2 = jnp.maximum(
        jnp.einsum("bsd,dm->bsm", x2 * m_in, w,
                   precision=jax.lax.Precision.HIGHEST) + bias, 0.0) * m_out
    assert fused.shape == (B, S, Dmlp)
    assert bool(jnp.allclose(fused, ref2, rtol=1e-2, atol=1e-2)), "fused MLP mismatch"

    print("KERNEL_OK")
</pallas_src>

<mosaic_0001>
module attributes {stable_mosaic.version = 11 : i64} {
  func.func @shared_dropout_kernel(%arg0: i32, %arg1: i32, %arg2: memref<1x8x128xf32, #tpu.memory_space<vmem>>, %arg3: memref<1x1x128xf32, #tpu.memory_space<vmem>>, %arg4: memref<1x8x128xf32, #tpu.memory_space<vmem>>) attributes {dimension_semantics = [#tpu.dimension_semantics<parallel>, #tpu.dimension_semantics<parallel>], iteration_bounds = array<i64: 2, 1>, scalar_prefetch = 0 : i64, scratch_operands = 0 : i64, tpu.core_type = #tpu.core_type<tc>, window_params = [{transform_indices = @transform_0, window_bounds = array<i64: 1, 8, 128>}, {transform_indices = @transform_1, window_bounds = array<i64: 1, 1, 128>}, {transform_indices = @transform_2, window_bounds = array<i64: 1, 8, 128>}]} {
    %c0 = arith.constant 0 : index
    %c0_0 = arith.constant 0 : index
    %c0_1 = arith.constant 0 : index
    %0 = vector.load %arg2[%c0, %c0_0, %c0_1] : memref<1x8x128xf32, #tpu.memory_space<vmem>>, vector<1x8x128xf32>
    %c0_2 = arith.constant 0 : index
    %c0_3 = arith.constant 0 : index
    %c0_4 = arith.constant 0 : index
    %1 = vector.load %arg3[%c0_2, %c0_3, %c0_4] : memref<1x1x128xf32, #tpu.memory_space<vmem>>, vector<1x1x128xf32>
    %2 = vector.broadcast %1 : vector<1x1x128xf32> to vector<1x8x128xf32>
    %3 = arith.mulf %0, %2 : vector<1x8x128xf32>
    %c0_5 = arith.constant 0 : index
    %c0_6 = arith.constant 0 : index
    %c0_7 = arith.constant 0 : index
    %4 = vector.load %arg4[%c0_5, %c0_6, %c0_7] : memref<1x8x128xf32, #tpu.memory_space<vmem>>, vector<1x8x128xf32>
    tpu.vector_store %arg4[%c0_5, %c0_6, %c0_7], %3 {strides = array<i32>} : memref<1x8x128xf32, #tpu.memory_space<vmem>>, vector<1x8x128xf32>,
    return
  }
  func.func @transform_0(%arg0: i32, %arg1: i32) -> (i32, i32, i32) {
    %c0_i32 = arith.constant 0 : i32
    %c0_i32_0 = arith.constant 0 : i32
    return %arg0, %arg1, %c0_i32 : i32, i32, i32
  }
  func.func @transform_1(%arg0: i32, %arg1: i32) -> (i32, i32, i32) {
    %c0_i32 = arith.constant 0 : i32
    %c0_i32_0 = arith.constant 0 : i32
    %c0_i32_1 = arith.constant 0 : i32
    return %arg0, %c0_i32, %c0_i32_0 : i32, i32, i32
  }
  func.func @transform_2(%arg0: i32, %arg1: i32) -> (i32, i32, i32) {
    %c0_i32 = arith.constant 0 : i32
    %c0_i32_0 = arith.constant 0 : i32
    return %arg0, %arg1, %c0_i32 : i32, i32, i32
  }
}

</mosaic_0001>

<bundles_post_ra>
// kernel: tpu_custom_call.1
= control target key start
LH: loop header
LB: loop body
LE: loop exit
PB: predicated region body
PF: predicated region fallthrough
CT: control target
= control target key end

     0   :  { %7 = vsyncpa [#allocation3], 0  ;;  %s710_s0 = inlined_call_operand.hbm [shape: f32[2,8,128], index: 0, kind: input, shape index: {}]   ;;  %s711_s1 = inlined_call_operand.hbm [shape: f32[2,1,128], index: 1, kind: input, shape index: {}]   ;;  %s712_s2 = inlined_call_operand.hbm [shape: f32[2,8,128], index: 2, kind: output, shape index: {}]  }
   0x1   :  { %9 = vsyncpa [#allocation3 + $0x1], 0 }
   0x2   :  { %10 = vsyncpa [#allocation6], 0 }
   0x3   :  { %12 = vsyncpa [#allocation6 + $0x1], 0 }
   0x4   :  { %13 = vsyncpa [#allocation4], 0 }
   0x5   :  { %15 = vsyncpa [#allocation4 + $0x1], 0  ;;  %s580_s9 = smov 0   ;;  %s582_s10 = smov 0  }
   0x6   :  { %s584_s11 = smov 0   ;;  %s586_s12 = smov 0  }
   0x7   :  { %s588_s13 = smov 0   ;;  %s590_s14 = smov 0  }
   0x8 LB: > { %s336_s15 = sadd.s32 4294967295, %s563_s14   ;;  %s337_s16 = sadd.s32 4294967294, %s563_s14   ;;  %s563_s14 = sphi %s590_s14, %s21_s14   ;;  %s559_s13 = sphi %s588_s13, %s721_s13   ;;  %s555_s12 = sphi %s586_s12, %s720_s12   ;;  %s551_s11 = sphi %s584_s11, %s719_s11   ;;  %s547_s10 = sphi %s582_s10, %s718_s10   ;;  %s543_s9 = sphi %s580_s9, %s717_s9  }
   0x9   : > { %s33_s17 = sadd.s32 1, %s559_s13  ;;  %s42_s18 = sadd.s32 1, %s551_s11 }
   0xa   : > { %p35_p0 = scmp.ge.s32.totalorder %s33_s17, 2  ;;  %p49_p1 = scmp.ne.s32.totalorder %s551_s11, %s547_s10 }
   0xb   : > { %p50_p2 = scmp.eq.s32.totalorder %s563_s14, 0  ;;  %p55_p3 = scmp.ne.s32.totalorder %s547_s10, %s543_s9 }
   0xc   : > { %s723_s17 = smov (%p35_p0, %s33_s17), 0  ;;  %p56_p5 = scmp.eq.s32.totalorder %s336_s15, 0 }
   0xd   : > { %p621_p4 = por %p50_p2, %p49_p1  ;;  %s37_s20 = ssub.s32 %s559_s13, %s723_s17 }
   0xe   : > { %p107_p6 = scmp.eq.s32.totalorder %s336_s15, 1  ;;  %p40_p7 = scmp.eq.s32.totalorder %s37_s20, 0 }
   0xf   : > { %p627_p8 = por %p56_p5, %p55_p3  ;;  %p113_p10 = scmp.eq.s32.totalorder %s337_s16, 1 }
  0x10   : > { %p631_p9 = por %p107_p6, %p49_p1  ;;  %p339_p12 = scmp.ge.s32.totalorder %s563_s14, 2 }
  0x11   : > { %s636_s23 = scalar_select %p40_p7, %s551_s11, %s42_s18  }
  0x12   : > { %p638_p11 = por %p113_p10, %p55_p3  ;;  %p366_p13 = scmp.lt.s32.totalorder %s563_s14, 2 }
  0x13   : > { %s133_s25 = sand.u32 1, %s551_s11   ;;  %s341_s27 = sshll.u32 %s559_s13, 3 }
  0x14   : > { %s340_s26 = sshll.u32 %s133_s25, 3  ;;  %s142_s30 = scalar_lea.hbm %s710_s0, %s341_s27 }
  0x15   : > { %s137_s3 = scalar_lea.vmem [#allocation2], %s340_s26  ;;  %s144_s5 = sshll.u32 %s142_s30, 4  ;;  %s145_s5 = int_to_ptr.hbm [resolvable:$true] %s144_s5 }
  0x16   : > { %s146_s4 = sshll.u32 %s137_s3, 4  ;;  %p356_p0 = pnand %p366_p13, %p621_p4  ;;  %s147_s4 = int_to_ptr.vmem [resolvable:$true] %s146_s4 }
  0x17   : > { %p342_p1 = scmp.ge.s32.totalorder %s563_s14, 1  ;;  %p168_p2 = scmp.lt.s32.totalorder %s563_s14, 3 }
  0x18   : > { %s134_s6 = scalar_lea.sflag [#allocation3], %s133_s25  ;;  %s159_s15 = scalar_lea.hbm %s711_s1, %s559_s13 }
  0x19   : > { %358 = dma.hbm_to_vmem [thread:$0]  (!%p356_p0), %s145_s5, 128, %s147_s4, %s134_s6  }
  0x1a   : > { %p169_p3 = pnand %p342_p1, %p168_p2  ;;  %s156_s16 = scalar_lea.vmem [#allocation5], %s133_s25 }
  0x1b   : > { %s163_s18 = sshll.u32 %s156_s16, 4  ;;  %s161_s20 = sshll.u32 %s159_s15, 4  ;;  %s164_s18 = int_to_ptr.vmem [resolvable:$true] %s163_s18  ;;  %s162_s20 = int_to_ptr.hbm [resolvable:$true] %s161_s20 }
  0x1c   : > { %s154_s26 = scalar_lea.sflag [#allocation6], %s133_s25  ;;  %172 = sbr.rel (%p169_p3) target bundleno = 51 (0x33), region = 28 }
  0x1d   : > { %361 = dma.hbm_to_vmem [thread:$0]  (!%p356_p0), %s162_s20, 16, %s164_s18, %s154_s26  }
  0x1e   : > { %s658_s19 = sand.u32 (!%p169_p3), 1, %s547_s10  }
  0x1f   : > { %s343_s27 = sshll.u32 (!%p169_p3), %s658_s19, 3  ;;  %s175_s28 = scalar_lea.sflag (!%p169_p3), [#allocation3], %s658_s19 }
  0x20   : > { %s178_s29 = scalar_lea.vmem (!%p169_p3), [#allocation2], %s343_s27 }
  0x21   : > { %530 = dma.done.wait (%p627_p8), %s175_s28, 128  }
  0x22   : > { %532 = vsyncadd (%p627_p8), %s175_s28, 4294967168  ;;  %s185_s25 = scalar_lea.sflag [#allocation6], %s658_s19  ;;  %s187_s30 = scalar_lea.vmem [#allocation5], %s658_s19 }
  0x23   : > { %534 = dma.done.wait (%p627_p8), %s185_s25, 16  }
  0x24   : > { %536 = vsyncadd (%p627_p8), %s185_s25, 4294967280  ;;  %s346_s3 = sshll.u32 %s555_s12, 3  ;;  %s212_s7 = scalar_lea.vmem [#allocation7], %s343_s27  ;;  %v213_v0 = vld [vmem:[%s178_s29] sm:$0xff] }
  0x25   : > { %s232_s6 = scalar_lea.hbm %s712_s2, %s346_s3  ;;  %s234_s8 = sshll.u32 %s212_s7, 4  ;;  %v416_v1 = vld [vmem:[%s187_s30] ss:$0 sm:$0xff]  ;;  %s235_s8 = int_to_ptr.vmem [resolvable:$true] %s234_s8 }
  0x26   : > { %s236_s15 = sshll.u32 %s232_s6, 4  ;;  %v218_v2 = vmul.f32 %v416_v1, %v213_v0  ;;  %s221_s16 = scalar_lea.sflag [#allocation4], %s658_s19  ;;  %s237_s15 = int_to_ptr.hbm [resolvable:$true] %s236_s15 }
  0x27   : > { %s491_s21 = sshra.s32 %s237_s15, 4  ;;  %s497_s26 = scalar_lea.hbm %s712_s2, 16  ;;  %s492_s21 = int_to_ptr.hbm [resolvable:$true] %s491_s21 }
  0x28   : > { %219 = vst [vmem:[%s212_s7] sm:$0xff] %v218_v2  ;;  %s493_s18 = scalar_lea.hbm %s492_s21, 8  ;;  %p498_p7 = scmp.lt.s32.totalorder %s492_s21, %s712_s2 }
  0x29   : > { %p494_p4 = scmp.ne.s32.totalorder %s492_s21, %s493_s18  ;;  %p499_p8 = scmp.lt.s32.totalorder %s497_s26, %s493_s18 }
  0x2b   : > { %p495_p5 = pnand %p494_p4, %p631_p9  ;;  %p500_p10 = por %p499_p8, %p498_p7 }
  0x2d   : > { %p496_p6 = pneg %p495_p5 }
  0x2f   : > { %p501_p13 = pnand %p500_p10, %p496_p6 }
  0x31   : > { %504 = shalt.err (!%p501_p13)
}
  0x32   : > { %353 = dma.vmem_to_hbm [thread:$0]  (%p631_p9), %s235_s8, 128, %s237_s15, %s221_s16  }
  0x33 PF: > { %s248_s19 = sand.u32 1, %s543_s9   ;;  %p363_p0 = pnand %p339_p12, %p638_p11 }
  0x34   : > { %s249_s29 = scalar_lea.sflag [#allocation4], %s248_s19 }
  0x35   : > { %p364_p1 = pneg %p363_p0 }
  0x37   : > { %538 = dma.done.wait (%p364_p1), %s249_s29, 128  }
  0x38   : > { %540 = vsyncadd (%p364_p1), %s249_s29, 4294967168  ;;  %s21_s14 = sadd.s32 1, %s563_s14   ;;  %s717_s9 = smov %s547_s10 }
  0x39   : > { %p18_p2 = scmp.ge.s32.totalorder %s21_s14, 4   ;;  %s718_s10 = smov %s551_s11 }
  0x3a   : > { %s719_s11 = smov %s636_s23  ;;  %s720_s12 = smov %s559_s13 }
  0x3b   : > { %s721_s13 = smov %s723_s17  ;;  %20 = sbr.rel (!%p18_p2) target bundleno = 8 (0x8), region = 86 }
  0x40   :  { %255 = vsyncpa [#allocation3], 1 }
  0x41   :  { %257 = vsyncpa [#allocation3 + $0x1], 1 }
  0x42   :  { %258 = vsyncpa [#allocation6], 1 }
  0x43   :  { %260 = vsyncpa [#allocation6 + $0x1], 1 }
  0x44   :  { %261 = vsyncpa [#allocation4], 1 }
  0x45   :  { %263 = vsyncpa [#allocation4 + $0x1], 1 }

</bundles_post_ra>
